<compile_context>
chip_gen: v6e
topology: v6e:2x2x1
jax: 0.10.0
libtpu: 0.0.40
codegen_flags: <defaults>
</compile_context>

<pallas_src>
import math

import jax
import jax.numpy as jnp
from jax.experimental import pallas as pl
from jax.experimental.pallas import tpu as pltpu

LN_EPS = 1e-5

# Flip to jnp.bfloat16 on v6e/v7x to run the T-MLP / predictor / head matmuls on the
# bf16-native MXU (review item 3).  Kept float32 by default so the runnable test stays
# bit-faithful to the f32 reference (v5e guidance: keep f32 on the VPU path).
# The distance matmul and the encoder always stay f32.
MXU_DTYPE = jnp.float32


def _mm(a, b):
    return jnp.dot(a.astype(MXU_DTYPE), b.astype(MXU_DTYPE),
                   preferred_element_type=jnp.float32)


def _round_up(x, m):
    return ((x + m - 1) // m) * m


def _pick_tile(rows, max_tile):
    """Largest row tile <= max_tile; prefer >=2 grid steps when possible so both v7x
    TensorCores get work on the 'parallel' axis (v5e/v6e: harmless)."""
    r8 = _round_up(rows, 8)
    if r8 <= 8:
        return 8
    if r8 <= max_tile:
        return max(8, _round_up((rows + 1) // 2, 8))
    return max_tile


def _layernorm(h, g, b):
    mu = jnp.mean(h, axis=-1, keepdims=True)
    var = jnp.mean((h - mu) ** 2, axis=-1, keepdims=True)
    return (h - mu) * jax.lax.rsqrt(var + LN_EPS) * g + b


def _const_spec(a):
    return pl.BlockSpec(a.shape, lambda i, n=a.ndim: (0,) * n)


# ----------------------------------------------------------------------------
# Kernel 1: encoder  (Identity scale -> linear -> residual MLP block ->
#                     mixer LayerNorm -> K linear)   — one big row tile / step.
# Row-vector params (biases / LN affine) are packed into one (5, d_main) buffer.
# ----------------------------------------------------------------------------
def encode_kernel(x_ref, wl_ref, w0a_ref, w0b_ref, wk_ref, vdm_ref, b0a_ref,
                  xo_ref, ko_ref):
    bl = vdm_ref[0:1, :]
    b0b = vdm_ref[1:2, :]
    lng = vdm_ref[2:3, :]
    lnb = vdm_ref[3:4, :]
    bk = vdm_ref[4:5, :]

    x = x_ref[...]
    h = jnp.dot(x, wl_ref[...], preferred_element_type=jnp.float32) + bl
    # encoder block 0 (no pre-norm), residual; dropouts inactive (eval)
    z = jnp.dot(h, w0a_ref[...], preferred_element_type=jnp.float32) + b0a_ref[...]
    z = jnp.maximum(z, 0.0)
    z = jnp.dot(z, w0b_ref[...], preferred_element_type=jnp.float32) + b0b
    h = h + z
    hn = _layernorm(h, lng, lnb)
    ko_ref[...] = jnp.dot(hn, wk_ref[...], preferred_element_type=jnp.float32) + bk
    xo_ref[...] = h


def encode(params, x, max_tile=1024):
    R, d_in = x.shape
    d_main = params['wl'].shape[1]
    tb = _pick_tile(R, max_tile)
    Rp = _round_up(R, tb)
    if Rp != R:
        x = jnp.pad(x, ((0, Rp - R), (0, 0)))

    vdm = jnp.concatenate([params['bl'], params['b0b'], params['lng'],
                           params['lnb'], params['bk']], axis=0)        # (5, d_main)
    weights = [params['wl'], params['w0a'], params['w0b'], params['wk'], vdm, params['b0a']]

    ex, ek = pl.pallas_call(
        encode_kernel,
        grid=(Rp // tb,),
        in_specs=[pl.BlockSpec((tb, d_in), lambda i: (i, 0))] + [_const_spec(w) for w in weights],
        out_specs=(pl.BlockSpec((tb, d_main), lambda i: (i, 0)),
                   pl.BlockSpec((tb, d_main), lambda i: (i, 0))),
        out_shape=(jax.ShapeDtypeStruct((Rp, d_main), jnp.float32),
                   jax.ShapeDtypeStruct((Rp, d_main), jnp.float32)),
        compiler_params=pltpu.CompilerParams(dimension_semantics=("parallel",)),
    )(x, *weights)
    return ex[:R], ek[:R]


# ----------------------------------------------------------------------------
# Kernel 2: fused exact squared-L2 distance (faiss IndexFlatL2 equivalent) +
#           top-C selection.  The (TB, N) distance tile lives only in VMEM/vregs;
#           only (B, C) distances + (B, C) indices are written to HBM.
# TODO(synk): for very large candidate pools, tile N with an 'arbitrary' grid axis and
#             merge a running top-C in scratch instead of holding (N, d) as one block.
# ----------------------------------------------------------------------------
def dist_topk_kernel(k_ref, ck_ref, cksq_ref, dist_ref, idx_ref):
    k = k_ref[...]                                            # (TB, d)
    ck = ck_ref[...]                                          # (N, d)
    k2 = jnp.sum(k * k, axis=-1, keepdims=True)               # (TB, 1)
    cross = jax.lax.dot_general(k, ck, (((1,), (1,)), ((), ())),
                                preferred_element_type=jnp.float32)     # (TB, N) = k @ ck.T
    dist = k2 - 2.0 * cross + cksq_ref[...]                   # expanded-form squared L2

    TB, N = dist.shape
    C = dist_ref.shape[1]
    f32 = jnp.float32
    lane = jax.lax.broadcasted_iota(jnp.int32, (TB, N), 1).astype(f32)
    out_lane = jax.lax.broadcasted_iota(jnp.int32, (TB, C), 1)
    BIG = 1e30

    top_d = jnp.zeros((TB, C), f32)
    top_i = jnp.zeros((TB, C), f32)
    for c in range(C):                                        # selection: C exact argmins
        m = jnp.min(dist, axis=-1, keepdims=True)             # (TB, 1) smallest remaining
        pos = jnp.min(jnp.where(dist == m, lane, BIG),
                      axis=-1, keepdims=True)                 # first (lowest-index) argmin
        top_d = jnp.where(out_lane == c, m, top_d)
        top_i = jnp.where(out_lane == c, pos, top_i)
        dist = jnp.where(lane == pos, BIG, dist)              # mask selected entry out
    dist_ref[...] = top_d                                     # lane-dense (TB, C)
    idx_ref[...] = top_i.astype(jnp.int32)


def dist_topk(k, candidate_k, context_size, max_tile=512):
    B, d = k.shape
    N = candidate_k.shape[0]
    tb = _pick_tile(B, max_tile)
    Bp = _round_up(B, tb)
    if Bp != B:
        k = jnp.pad(k, ((0, Bp - B), (0, 0)))
    ck_sq = jnp.sum(candidate_k * candidate_k, axis=-1)[None, :]         # (1, N) cheap glue

    top_d, top_i = pl.pallas_call(
        dist_topk_kernel,
        grid=(Bp // tb,),
        in_specs=[pl.BlockSpec((tb, d), lambda i: (i, 0)),
                  pl.BlockSpec((N, d), lambda i: (0, 0)),
                  pl.BlockSpec((1, N), lambda i: (0, 0))],
        out_specs=(pl.BlockSpec((tb, context_size), lambda i: (i, 0)),
                   pl.BlockSpec((tb, context_size), lambda i: (i, 0))),
        out_shape=(jax.ShapeDtypeStruct((Bp, context_size), jnp.float32),
                   jax.ShapeDtypeStruct((Bp, context_size), jnp.int32)),
        compiler_params=pltpu.CompilerParams(dimension_semantics=("parallel",)),
    )(k, candidate_k, ck_sq)
    return top_d[:B], top_i[:B]


# ----------------------------------------------------------------------------
# Kernel 3: mixer + predictor + head.  Context-major layout: the C context rows per
#           query are passed as (C, B, d) / (C, B, 1) slabs, so the T-MLP / diff / mix
#           are a short unrolled loop over C with no replication matrices and no
#           in-kernel gather.  Softmax is computed on the lane-dense (TB, C) top-dist
#           tile (similarities == -top_dist, exactly as the PyTorch module defines them).
# ----------------------------------------------------------------------------
def mixer_kernel(x_ref, k_ref, topd_ref, ctxk_ref, ctxy_ref,
                 vdm_ref, vdb_ref, w_in_ref, w_out_ref, head_ref,
                 y_ref, probs_ref):
    # ---- unpack packed weights (static slices, zero-cost ref views) ----
    le_w = vdm_ref[0:1, :]
    le_b = vdm_ref[1:2, :]
    p_lng = vdm_ref[2:3, :]
    p_lnb = vdm_ref[3:4, :]
    bp1 = vdm_ref[4:5, :]
    h_lng = vdm_ref[5:6, :]
    h_lnb = vdm_ref[6:7, :]
    bt0 = vdb_ref[0:1, :]
    bp0 = vdb_ref[1:2, :]
    wt0 = w_in_ref[0]
    wp0 = w_in_ref[1]
    wt1 = w_out_ref[0]
    wp1 = w_out_ref[1]

    x = x_ref[...]                        # (TB, d)
    k = k_ref[...]                        # (TB, d)
    top_d = topd_ref[...]                 # (TB, C) ascending squared-L2 distances
    TB, d = x.shape
    C = top_d.shape[1]
    d_main = d

    wh = head_ref[0:d_main, :]
    bh = head_ref[d_main:d_main + 1, :]

    # ---- softmax over the C context rows (lane-dense, exact division) ----
    sim = -top_d                                                   # expanded-form similarities
    m = jnp.max(sim, axis=-1, keepdims=True)
    e = jnp.exp(sim - m)
    denom = jnp.sum(e, axis=-1, keepdims=True)
    probs = e / denom
    probs_ref[...] = probs                # context_dropout inactive (eval)

    out_lane = jax.lax.broadcasted_iota(jnp.int32, (TB, C), 1)

    # ---- context values + mix, unrolled over C (context-major) ----
    ctx = jnp.zeros_like(x)
    for c in range(C):
        ck_c = ctxk_ref[c]                                         # (TB, d)
        cy_c = ctxy_ref[c]                                         # (TB, 1)
        diff = k - ck_c
        t = jnp.maximum(_mm(diff, wt0) + bt0, 0.0)                 # dropout0 off
        t = _mm(t, wt1)                                            # no bias
        val = cy_c * le_w + le_b + t                               # label enc + T-MLP
        p_c = jnp.sum(jnp.where(out_lane == c, probs, 0.0),
                      axis=-1, keepdims=True)                      # (TB, 1) prob column
        ctx = ctx + p_c * val
    h = x + ctx

    # ---- predictor block (pre-norm residual MLP, dropouts inactive) ----
    z = _layernorm(h, p_lng, p_lnb)
    z = jnp.maximum(_mm(z, wp0) + bp0, 0.0)
    z = _mm(z, wp1) + bp1
    h = h + z

    # ---- head: LayerNorm -> ReLU -> Linear(d_main, d_out) ----
    z = jnp.maximum(_layernorm(h, h_lng, h_lnb), 0.0)
    y_ref[...] = _mm(z, wh) + bh


def mixer_head(params, x, k, top_dist, ctx_k, ctx_y, max_tile=128):
    B, d = x.shape
    C = top_dist.shape[1]
    d_out = params['wh'].shape[1]
    d_block = params['wt0'].shape[1]

    TB = _pick_tile(B, max_tile)
    Bp = _round_up(B, TB)
    if Bp != B:
        pad = Bp - B
        x = jnp.pad(x, ((0, pad), (0, 0)))
        k = jnp.pad(k, ((0, pad), (0, 0)))
        top_dist = jnp.pad(top_dist, ((0, pad), (0, 0)))
        ctx_k = jnp.pad(ctx_k, ((0, pad), (0, 0), (0, 0)))
        ctx_y = jnp.pad(ctx_y, ((0, pad), (0, 0)))

    # context-major slabs: (C, Bp, d) / (C, Bp, 1)
    ctx_k_cm = jnp.transpose(ctx_k, (1, 0, 2))
    ctx_y_cm = jnp.transpose(ctx_y, (1, 0))[:, :, None].astype(jnp.float32)

    # packed weights (fewer DMA descriptors / pipeline buffers per step)
    vdm = jnp.concatenate([params['le_w'], params['le_b'], params['p_lng'], params['p_lnb'],
                           params['bp1'], params['h_lng'], params['h_lnb']], axis=0)  # (7, d)
    vdb = jnp.concatenate([params['bt0'], params['bp0']], axis=0)                      # (2, d_block)
    w_in = jnp.stack([params['wt0'], params['wp0']], axis=0)                           # (2, d, d_block)
    w_out = jnp.stack([params['wt1'], params['wp1']], axis=0)                          # (2, d_block, d)
    head_p = jnp.concatenate([params['wh'], params['bh']], axis=0)                     # (d+1, d_out)
    weights = [vdm, vdb, w_in, w_out, head_p]

    y, probs = pl.pallas_call(
        mixer_kernel,
        grid=(Bp // TB,),
        in_specs=[pl.BlockSpec((TB, d), lambda i: (i, 0)),          # x
                  pl.BlockSpec((TB, d), lambda i: (i, 0)),          # k
                  pl.BlockSpec((TB, C), lambda i: (i, 0)),          # top_dist (lane-dense)
                  pl.BlockSpec((C, TB, d), lambda i: (0, i, 0)),    # context keys (context-major)
                  pl.BlockSpec((C, TB, 1), lambda i: (0, i, 0))]    # context targets
                 + [_const_spec(w) for w in weights],
        out_specs=(pl.BlockSpec((TB, d_out), lambda i: (i, 0)),
                   pl.BlockSpec((TB, C), lambda i: (i, 0))),
        out_shape=(jax.ShapeDtypeStruct((Bp, d_out), jnp.float32),
                   jax.ShapeDtypeStruct((Bp, C), jnp.float32)),
        compiler_params=pltpu.CompilerParams(dimension_semantics=("parallel",)),
    )(x, k, top_dist, ctx_k_cm, ctx_y_cm, *weights)
    return y[:B], probs[:B]


# ----------------------------------------------------------------------------
# Full forward (eval path: is_train=False, y=None, idx=None, context_idx=None)
# ----------------------------------------------------------------------------
def tabr_forward(params, x_num, candidate_x_num, candidate_y, candidate_idx, context_size):
    # encode candidates and queries as two separate launches (no concat HBM copy)
    _, candidate_k = encode(params, candidate_x_num)
    x, k = encode(params, x_num)

    # faiss IndexFlatL2.search equivalent: fused exact L2 + top-C selection in one kernel
    # TODO(synk): exact selection is used; tie ordering may differ from faiss.
    top_dist, context_idx = dist_topk(k, candidate_k, context_size)

    absolute_context_idx = candidate_idx[context_idx]            # (B, C) int gather (glue)

    # TODO(synk): context-row gather is an XLA gather here; the next step is an in-kernel
    #             row-DMA gather driven by scalar-prefetched context_idx.
    ctx_k = candidate_k[context_idx]                             # (B, C, d)
    ctx_y = candidate_y[context_idx]                             # (B, C)

    y_pred, raw_probs = mixer_head(params, x, k, top_dist, ctx_k, ctx_y)
    return y_pred, absolute_context_idx, raw_probs


# ----------------------------------------------------------------------------
# Pure-JAX reference (mirrors the PyTorch forward) for a correctness check
# ----------------------------------------------------------------------------
def _ln_ref(h, g, b):
    mu = jnp.mean(h, -1, keepdims=True)
    var = jnp.mean((h - mu) ** 2, -1, keepdims=True)
    return (h - mu) / jnp.sqrt(var + LN_EPS) * g + b


def _encode_ref(p, x):
    h = x @ p['wl'] + p['bl']
    z = jnp.maximum(h @ p['w0a'] + p['b0a'], 0.0) @ p['w0b'] + p['b0b']
    h = h + z
    kk = _ln_ref(h, p['lng'], p['lnb']) @ p['wk'] + p['bk']
    return h, kk


def tabr_forward_ref(p, x_num, cx, cy, cidx, C):
    _, ck_all = _encode_ref(p, cx)
    x, k = _encode_ref(p, x_num)
    dist = (jnp.sum(k * k, -1, keepdims=True) - 2.0 * (k @ ck_all.T)
            + jnp.sum(ck_all * ck_all, -1)[None, :])
    neg_top, context_idx = jax.lax.top_k(-dist, C)
    abs_idx = cidx[context_idx]
    ctx_k = ck_all[context_idx]
    ctx_y = cy[context_idx]
    raw_probs = jax.nn.softmax(neg_top, axis=-1)     # expanded-form similarities, as in PyTorch
    diff = k[:, None, :] - ctx_k
    cy_emb = ctx_y[..., None] * p['le_w'][None] + p['le_b'][None]
    t = jnp.maximum(diff @ p['wt0'] + p['bt0'], 0.0) @ p['wt1']
    values = cy_emb + t
    h = x + jnp.einsum('bc,bcd->bd', raw_probs, values)
    z = _ln_ref(h, p['p_lng'], p['p_lnb'])
    z = jnp.maximum(z @ p['wp0'] + p['bp0'], 0.0) @ p['wp1'] + p['bp1']
    h = h + z
    y = jnp.maximum(_ln_ref(h, p['h_lng'], p['h_lnb']), 0.0) @ p['wh'] + p['bh']
    return y, abs_idx, raw_probs


# ----------------------------------------------------------------------------
# Deterministic parameter init (shapes from TabrModelContextFreeze.__init__)
# ----------------------------------------------------------------------------
def init_params(key, d_in, d_main, d_block, d_out):
    ks = jax.random.split(key, 24)
    w = lambda i, shape, fan: jax.random.normal(ks[i], shape, jnp.float32) / math.sqrt(fan)
    bound = 1.0 / math.sqrt(2.0)
    p = {
        'wl': w(0, (d_in, d_main), d_in), 'bl': w(1, (1, d_main), d_in),
        'w0a': w(2, (d_main, d_block), d_main), 'b0a': w(3, (1, d_block), d_main),
        'w0b': w(4, (d_block, d_main), d_block), 'b0b': w(5, (1, d_main), d_block),
        'lng': jnp.ones((1, d_main), jnp.float32), 'lnb': jnp.zeros((1, d_main), jnp.float32),
        'wk': w(6, (d_main, d_main), d_main), 'bk': w(7, (1, d_main), d_main),
        # label_encoder = nn.Linear(1, d_main), uniform(-1/sqrt(2), 1/sqrt(2))
        'le_w': jax.random.uniform(ks[8], (1, d_main), jnp.float32, -bound, bound),
        'le_b': jax.random.uniform(ks[9], (1, d_main), jnp.float32, -bound, bound),
        'wt0': w(10, (d_main, d_block), d_main), 'bt0': w(11, (1, d_block), d_main),
        'wt1': w(12, (d_block, d_main), d_block),
        'p_lng': jnp.ones((1, d_main), jnp.float32), 'p_lnb': jnp.zeros((1, d_main), jnp.float32),
        'wp0': w(13, (d_main, d_block), d_main), 'bp0': w(14, (1, d_block), d_main),
        'wp1': w(15, (d_block, d_main), d_block), 'bp1': w(16, (1, d_main), d_block),
        'h_lng': jnp.ones((1, d_main), jnp.float32), 'h_lnb': jnp.zeros((1, d_main), jnp.float32),
        'wh': w(17, (d_main, d_out), d_main), 'bh': w(18, (1, d_out), d_main),
    }
    return p


if __name__ == "__main__":
    # small shapes consistent with the module
    B, N = 8, 32            # query batch, candidate pool
    d_in, d_main, d_block, d_out = 16, 32, 64, 1
    context_size = 8

    key = jax.random.PRNGKey(0)
    k1, k2, k3, k4 = jax.random.split(key, 4)
    x_num = jax.random.normal(k1, (B, d_in), jnp.float32)              # x_['num']
    candidate_x_num = jax.random.normal(k2, (N, d_in), jnp.float32)    # candidate_x_['num']
    candidate_y = jax.random.normal(k3, (N,), jnp.float32)             # regression targets
    candidate_idx = jnp.arange(100, 100 + N, dtype=jnp.int32)

    params = init_params(k4, d_in, d_main, d_block, d_out)

    y_pred, ctx_idx, raw_probs = tabr_forward(
        params, x_num, candidate_x_num, candidate_y, candidate_idx, context_size)
    jax.block_until_ready((y_pred, ctx_idx, raw_probs))

    y_ref, idx_ref, probs_ref = tabr_forward_ref(
        params, x_num, candidate_x_num, candidate_y, candidate_idx, context_size)

    assert y_pred.shape == (B, d_out) and ctx_idx.shape == (B, context_size)
    assert raw_probs.shape == (B, context_size)
    assert jnp.array_equal(ctx_idx, idx_ref)
    assert jnp.allclose(raw_probs, probs_ref, rtol=1e-2, atol=1e-2)
    assert jnp.allclose(y_pred, y_ref, rtol=1e-2, atol=1e-2)

    print("KERNEL_OK")
</pallas_src>

<mosaic_0001>
module attributes {stable_mosaic.version = 11 : i64} {
  func.func @encode_kernel(%arg0: i32, %arg1: memref<16x16xf32, #tpu.memory_space<vmem>>, %arg2: memref<16x32xf32, #tpu.memory_space<vmem>>, %arg3: memref<32x64xf32, #tpu.memory_space<vmem>>, %arg4: memref<64x32xf32, #tpu.memory_space<vmem>>, %arg5: memref<32x32xf32, #tpu.memory_space<vmem>>, %arg6: memref<5x32xf32, #tpu.memory_space<vmem>>, %arg7: memref<1x64xf32, #tpu.memory_space<vmem>>, %arg8: memref<16x32xf32, #tpu.memory_space<vmem>>, %arg9: memref<16x32xf32, #tpu.memory_space<vmem>>) attributes {dimension_semantics = [#tpu.dimension_semantics<parallel>], iteration_bounds = array<i64: 2>, scalar_prefetch = 0 : i64, scratch_operands = 0 : i64, tpu.core_type = #tpu.core_type<tc>, window_params = [{transform_indices = @transform_0, window_bounds = array<i64: 16, 16>}, {pipeline_mode = #tpu.pipeline_mode<synchronous>, transform_indices = @transform_1, window_bounds = array<i64: 16, 32>}, {pipeline_mode = #tpu.pipeline_mode<synchronous>, transform_indices = @transform_2, window_bounds = array<i64: 32, 64>}, {pipeline_mode = #tpu.pipeline_mode<synchronous>, transform_indices = @transform_3, window_bounds = array<i64: 64, 32>}, {pipeline_mode = #tpu.pipeline_mode<synchronous>, transform_indices = @transform_4, window_bounds = array<i64: 32, 32>}, {pipeline_mode = #tpu.pipeline_mode<synchronous>, transform_indices = @transform_5, window_bounds = array<i64: 5, 32>}, {pipeline_mode = #tpu.pipeline_mode<synchronous>, transform_indices = @transform_6, window_bounds = array<i64: 1, 64>}, {transform_indices = @transform_7, window_bounds = array<i64: 16, 32>}, {transform_indices = @transform_8, window_bounds = array<i64: 16, 32>}]} {
    %c0 = arith.constant 0 : index
    %c0_0 = arith.constant 0 : index
    %0 = vector.load %arg6[%c0, %c0_0] : memref<5x32xf32, #tpu.memory_space<vmem>>, vector<1x32xf32>
    %c1 = arith.constant 1 : index
    %c0_1 = arith.constant 0 : index
    %1 = vector.load %arg6[%c1, %c0_1] : memref<5x32xf32, #tpu.memory_space<vmem>>, vector<1x32xf32>
    %c2 = arith.constant 2 : index
    %c0_2 = arith.constant 0 : index
    %2 = vector.load %arg6[%c2, %c0_2] : memref<5x32xf32, #tpu.memory_space<vmem>>, vector<1x32xf32>
    %c3 = arith.constant 3 : index
    %c0_3 = arith.constant 0 : index
    %3 = vector.load %arg6[%c3, %c0_3] : memref<5x32xf32, #tpu.memory_space<vmem>>, vector<1x32xf32>
    %c4 = arith.constant 4 : index
    %c0_4 = arith.constant 0 : index
    %4 = vector.load %arg6[%c4, %c0_4] : memref<5x32xf32, #tpu.memory_space<vmem>>, vector<1x32xf32>
    %c0_5 = arith.constant 0 : index
    %c0_6 = arith.constant 0 : index
    %5 = vector.load %arg1[%c0_5, %c0_6] : memref<16x16xf32, #tpu.memory_space<vmem>>, vector<16x16xf32>
    %c0_7 = arith.constant 0 : index
    %c0_8 = arith.constant 0 : index
    %6 = vector.load %arg2[%c0_7, %c0_8] : memref<16x32xf32, #tpu.memory_space<vmem>>, vector<16x32xf32>
    %cst = arith.constant dense<0.000000e+00> : vector<16x32xf32>
    %7 = tpu.matmul %5, %6, %cst {dimension_numbers = #tpu.dot_dimension_numbers<[1], [0], [0], [1], [0, 0, 1, 1], [], []>} : vector<16x16xf32>, vector<16x32xf32>, vector<16x32xf32> -> vector<16x32xf32>
    %8 = vector.broadcast %0 : vector<1x32xf32> to vector<16x32xf32>
    %9 = arith.addf %7, %8 : vector<16x32xf32>
    %c0_9 = arith.constant 0 : index
    %c0_10 = arith.constant 0 : index
    %10 = vector.load %arg3[%c0_9, %c0_10] : memref<32x64xf32, #tpu.memory_space<vmem>>, vector<32x64xf32>
    %cst_11 = arith.constant dense<0.000000e+00> : vector<16x64xf32>
    %11 = tpu.matmul %9, %10, %cst_11 {dimension_numbers = #tpu.dot_dimension_numbers<[1], [0], [0], [1], [0, 0, 1, 1], [], []>} : vector<16x32xf32>, vector<32x64xf32>, vector<16x64xf32> -> vector<16x64xf32>
    %c0_12 = arith.constant 0 : index
    %c0_13 = arith.constant 0 : index
    %12 = vector.load %arg7[%c0_12, %c0_13] : memref<1x64xf32, #tpu.memory_space<vmem>>, vector<1x64xf32>
    %13 = vector.broadcast %12 : vector<1x64xf32> to vector<16x64xf32>
    %14 = arith.addf %11, %13 : vector<16x64xf32>
    %cst_14 = arith.constant 0.000000e+00 : f32
    %15 = vector.broadcast %cst_14 : f32 to vector<16x64xf32>
    %16 = arith.maximumf %14, %15 : vector<16x64xf32>
    %c0_15 = arith.constant 0 : index
    %c0_16 = arith.constant 0 : index
    %17 = vector.load %arg4[%c0_15, %c0_16] : memref<64x32xf32, #tpu.memory_space<vmem>>, vector<64x32xf32>
    %cst_17 = arith.constant dense<0.000000e+00> : vector<16x32xf32>
    %18 = tpu.matmul %16, %17, %cst_17 {dimension_numbers = #tpu.dot_dimension_numbers<[1], [0], [0], [1], [0, 0, 1, 1], [], []>} : vector<16x64xf32>, vector<64x32xf32>, vector<16x32xf32> -> vector<16x32xf32>
    %19 = vector.broadcast %1 : vector<1x32xf32> to vector<16x32xf32>
    %20 = arith.addf %18, %19 : vector<16x32xf32>
    %21 = arith.addf %9, %20 : vector<16x32xf32>
    %cst_18 = arith.constant dense<0.000000e+00> : vector<16xf32>
    %22 = vector.multi_reduction <add>, %21, %cst_18 [1] : vector<16x32xf32> to vector<16xf32>
    %23 = vector.shape_cast %22 : vector<16xf32> to vector<16x1xf32>
    %cst_19 = arith.constant 3.200000e+01 : f32
    %24 = vector.broadcast %cst_19 : f32 to vector<16x1xf32>
    %25 = arith.divf %23, %24 : vector<16x1xf32>
    %26 = vector.broadcast %25 : vector<16x1xf32> to vector<16x32xf32>
    %27 = arith.subf %21, %26 : vector<16x32xf32>
    %28 = arith.mulf %27, %27 : vector<16x32xf32>
    %cst_20 = arith.constant dense<0.000000e+00> : vector<16xf32>
    %29 = vector.multi_reduction <add>, %28, %cst_20 [1] : vector<16x32xf32> to vector<16xf32>
    %30 = vector.shape_cast %29 : vector<16xf32> to vector<16x1xf32>
    %cst_21 = arith.constant 3.200000e+01 : f32
    %31 = vector.broadcast %cst_21 : f32 to vector<16x1xf32>
    %32 = arith.divf %30, %31 : vector<16x1xf32>
    %33 = vector.broadcast %25 : vector<16x1xf32> to vector<16x32xf32>
    %34 = arith.subf %21, %33 : vector<16x32xf32>
    %cst_22 = arith.constant 9.99999974E-6 : f32
    %35 = vector.broadcast %cst_22 : f32 to vector<16x1xf32>
    %36 = arith.addf %32, %35 : vector<16x1xf32>
    %37 = math.rsqrt %36 : vector<16x1xf32>
    %38 = vector.broadcast %37 : vector<16x1xf32> to vector<16x32xf32>
    %39 = arith.mulf %34, %38 : vector<16x32xf32>
    %40 = vector.broadcast %2 : vector<1x32xf32> to vector<16x32xf32>
    %41 = arith.mulf %39, %40 : vector<16x32xf32>
    %42 = vector.broadcast %3 : vector<1x32xf32> to vector<16x32xf32>
    %43 = arith.addf %41, %42 : vector<16x32xf32>
    %c0_23 = arith.constant 0 : index
    %c0_24 = arith.constant 0 : index
    %44 = vector.load %arg5[%c0_23, %c0_24] : memref<32x32xf32, #tpu.memory_space<vmem>>, vector<32x32xf32>
    %cst_25 = arith.constant dense<0.000000e+00> : vector<16x32xf32>
    %45 = tpu.matmul %43, %44, %cst_25 {dimension_numbers = #tpu.dot_dimension_numbers<[1], [0], [0], [1], [0, 0, 1, 1], [], []>} : vector<16x32xf32>, vector<32x32xf32>, vector<16x32xf32> -> vector<16x32xf32>
    %46 = vector.broadcast %4 : vector<1x32xf32> to vector<16x32xf32>
    %47 = arith.addf %45, %46 : vector<16x32xf32>
    %c0_26 = arith.constant 0 : index
    %c0_27 = arith.constant 0 : index
    %48 = vector.load %arg9[%c0_26, %c0_27] : memref<16x32xf32, #tpu.memory_space<vmem>>, vector<16x32xf32>
    tpu.vector_store %arg9[%c0_26, %c0_27], %47 {strides = array<i32>} : memref<16x32xf32, #tpu.memory_space<vmem>>, vector<16x32xf32>,
    %c0_28 = arith.constant 0 : index
    %c0_29 = arith.constant 0 : index
    %49 = vector.load %arg8[%c0_28, %c0_29] : memref<16x32xf32, #tpu.memory_space<vmem>>, vector<16x32xf32>
    tpu.vector_store %arg8[%c0_28, %c0_29], %21 {strides = array<i32>} : memref<16x32xf32, #tpu.memory_space<vmem>>, vector<16x32xf32>,
    return
  }
  func.func @transform_0(%arg0: i32) -> (i32, i32) {
    %c0_i32 = arith.constant 0 : i32
    %c0_i32_0 = arith.constant 0 : i32
    return %arg0, %c0_i32 : i32, i32
  }
  func.func @transform_1(%arg0: i32) -> (i32, i32) {
    %c0_i32 = arith.constant 0 : i32
    %c0_i32_0 = arith.constant 0 : i32
    %c0_i32_1 = arith.constant 0 : i32
    return %c0_i32, %c0_i32_0 : i32, i32
  }
  func.func @transform_2(%arg0: i32) -> (i32, i32) {
    %c0_i32 = arith.constant 0 : i32
    %c0_i32_0 = arith.constant 0 : i32
    %c0_i32_1 = arith.constant 0 : i32
    return %c0_i32, %c0_i32_0 : i32, i32
  }
  func.func @transform_3(%arg0: i32) -> (i32, i32) {
    %c0_i32 = arith.constant 0 : i32
    %c0_i32_0 = arith.constant 0 : i32
    %c0_i32_1 = arith.constant 0 : i32
    return %c0_i32, %c0_i32_0 : i32, i32
  }
  func.func @transform_4(%arg0: i32) -> (i32, i32) {
    %c0_i32 = arith.constant 0 : i32
    %c0_i32_0 = arith.constant 0 : i32
    %c0_i32_1 = arith.constant 0 : i32
    return %c0_i32, %c0_i32_0 : i32, i32
  }
  func.func @transform_5(%arg0: i32) -> (i32, i32) {
    %c0_i32 = arith.constant 0 : i32
    %c0_i32_0 = arith.constant 0 : i32
    %c0_i32_1 = arith.constant 0 : i32
    return %c0_i32, %c0_i32_0 : i32, i32
  }
  func.func @transform_6(%arg0: i32) -> (i32, i32) {
    %c0_i32 = arith.constant 0 : i32
    %c0_i32_0 = arith.constant 0 : i32
    %c0_i32_1 = arith.constant 0 : i32
    return %c0_i32, %c0_i32_0 : i32, i32
  }
  func.func @transform_7(%arg0: i32) -> (i32, i32) {
    %c0_i32 = arith.constant 0 : i32
    %c0_i32_0 = arith.constant 0 : i32
    return %arg0, %c0_i32 : i32, i32
  }
  func.func @transform_8(%arg0: i32) -> (i32, i32) {
    %c0_i32 = arith.constant 0 : i32
    %c0_i32_0 = arith.constant 0 : i32
    return %arg0, %c0_i32 : i32, i32
  }
}

</mosaic_0001>

<bundles_post_ra>
// kernel: tpu_custom_call.1
= control target key start
LH: loop header
LB: loop body
LE: loop exit
PB: predicated region body
PF: predicated region fallthrough
CT: control target
= control target key end

     0   :  { %14 = vsyncpa [#allocation3], 0  ;;  %s1398_s0 = inlined_call_operand.vmem [shape: f32[32,16], index: 0, kind: input, shape index: {}]   ;;  %s1399_s1 = inlined_call_operand.vmem [shape: f32[16,32], index: 1, kind: input, shape index: {}]   ;;  %s1400_s2 = inlined_call_operand.vmem [shape: f32[32,64], index: 2, kind: input, shape index: {}]   ;;  %s1401_s3 = inlined_call_operand.vmem [shape: f32[64,32], index: 3, kind: input, shape index: {}]   ;;  %s1402_s4 = inlined_call_operand.vmem [shape: f32[32,32], index: 4, kind: input, shape index: {}]   ;;  %s1403_s5 = inlined_call_operand.vmem [shape: f32[5,32], index: 5, kind: input, shape index: {}]   ;;  %s1404_s6 = inlined_call_operand.vmem [shape: f32[1,64], index: 6, kind: input, shape index: {}]   ;;  %s1405_s7 = inlined_call_operand.hbm [shape: f32[32,32], index: 7, kind: output, shape index: {0}]   ;;  %s1406_s8 = inlined_call_operand.hbm [shape: f32[32,32], index: 8, kind: output, shape index: {1}]  }
   0x1   :  { %16 = vsyncpa [#allocation3 + $0x1], 0 }
   0x2   :  { %17 = vsyncpa [#allocation5], 0 }
   0x3   :  { %19 = vsyncpa [#allocation5 + $0x1], 0  ;;  %s1163_s27 = smov 0   ;;  %s1165_s28 = smov 0  }
   0x4   :  { %s1167_s29 = smov 0   ;;  %s1169_s30 = smov 0  }
   0x5 LB: > { %s1184_s9 = sadd.s32 4294967295, %s1112_s30   ;;  %s866_s10 = sadd.s32 4294967294, %s1112_s30   ;;  %s1112_s30 = sphi %s1169_s30, %s1418_s30   ;;  %s1108_s29 = sphi %s1167_s29, %s1417_s29   ;;  %s1104_s28 = sphi %s1165_s28, %s1416_s28   ;;  %s1100_s27 = sphi %s1163_s27, %s1415_s27  }
   0x6   : > { %s1188_s11 = sadd.s32 1, %s1112_s30   ;;  %s184_s12 = sadd.s32 1, %s1108_s29 }
   0x7   : > { %s181_s13 = ssub.s32 %s1112_s30, %s1188_s11  ;;  %p194_p0 = scmp.ne.s32.totalorder %s1108_s29, %s1104_s28 }
   0x8   : > { %p182_p1 = scmp.eq.s32.totalorder %s181_s13, 0  ;;  %p195_p2 = scmp.eq.s32.totalorder %s1184_s9, 1 }
   0x9   : > { %p200_p3 = scmp.ne.s32.totalorder %s1104_s28, %s1100_s27  ;;  %p201_p4 = scmp.eq.s32.totalorder %s866_s10, 1 }
   0xa   : > { %s1199_s14 = scalar_select %p182_p1, %s1108_s29, %s184_s12  }
   0xb   : > { %p1201_p5 = por %p195_p2, %p194_p0  ;;  %p1205_p6 = por %p201_p4, %p200_p3 }
   0xc   : > { %p869_p7 = scmp.ge.s32.totalorder %s1112_s30, 1  ;;  %p272_p8 = scmp.lt.s32.totalorder %s1112_s30, 3 }
   0xe   : > { %p273_p9 = pnand %p869_p7, %p272_p8 }
   0xf   : > { %s872_s21 = sshll.u32 (!%p273_p9), %s1184_s9, 1  ;;  %s1266_s12 = sand.u32 (!%p273_p9), 1, %s1104_s28  }
  0x10   : > { %276 = sbr.rel (%p273_p9) target bundleno = 1146 (0x47a), region = 48  ;;  %p312_p10 = scmp.lt.s32.totalorder (!%p273_p9), %s872_s21, 3 }
  0x11   : > { %s1408_s18 = sshll.u32 (!%p273_p9), %s1266_s12, 4  ;;  %s1407_s23 = sshll.u32 (!%p273_p9), %s1184_s9, 8 }
  0x12   : > { %s1274_s19 = scalar_lea.vmem (!%p273_p9), [#allocation2], %s1408_s18  ;;  %s1311_s26 = scalar_lea.hbm (!%p273_p9), %s1405_s7, %s1407_s23 }
  0x13   : > { %s756_s22 = sshll.u32 (!%p273_p9), %s1274_s19, 4  ;;  %s1114_s17 = smov (!%p273_p9), [#allocation2]   ;;  %s1313_s22 = int_to_ptr.vmem [resolvable:$true] %s756_s22 }
  0x14   : > { %s1022_s13 = scalar_lea.vmem (!%p273_p9), %s1313_s22, 256 }
  0x15   : > { %v327_v0 = vld [vmem:[%s1399_s1 + $0x8] sm:$0xff]  ;;  %v326_v1 = vld [vmem:[%s1399_s1] sm:$0xff]  ;;  %v417_v2 = vld [vmem:[%s1400_s2 + $0x18] sm:$0xff]  ;;  %s1420_s21 = smov (!%p312_p10, %s872_s21), 3  ;;  %vm332_vm0 = vcmask 130048   ;;  %vm425_vm1 = vcmask 261120   ;;  %p1023_p11 = scmp.ne.s32.totalorder %s1313_s22, %s1022_s13 }
  0x16   : > { %924 = vmatprep.subr.mxu0 %v327_v0  ;;  %931 = vmatprep.subr.mxu1 %v417_v2  ;;  %s873_s24 = sshll.u32 %s1420_s21, 3  ;;  %v416_v5 = vld [vmem:[%s1400_s2 + $0x10] sm:$0xff]  ;;  %v415_v6 = vld [vmem:[%s1400_s2 + $0x8] sm:$0xff]  ;;  %v414_v7 = vld [vmem:[%s1400_s2] sm:$0xff]  ;;  %vm521_vm2 = vcmask 523264  }
  0x17   : > { %925 = vmatpush3.msra.mxu0 %v327_v0  ;;  %932 = vmatpush3.msra.mxu1 %v417_v2  ;;  %s315_s10 = scalar_lea.vmem %s1398_s0, %s873_s24  ;;  %v516_v8 = vld [vmem:[%s1401_s3 + $0x38] sm:$0xff]  ;;  %v515_v9 = vld [vmem:[%s1401_s3 + $0x30] sm:$0xff]  ;;  %v514_v10 = vld [vmem:[%s1401_s3 + $0x28] sm:$0xff]  ;;  %p1024_p12 = pnand %p1023_p11, %p1201_p5 }
  0x18   : > { %926 = vmatprep.subr.mxu0 %v326_v1  ;;  %v324_v3 = vld [vmem:[%s315_s10] sm:$0xff]  ;;  %v325_v4 = vld [vmem:[%s315_s10 + $0x8] sm:$0xff]  ;;  %933 = vmatprep.subr.mxu1 %v416_v5  ;;  %v512_v17 = vld [vmem:[%s1401_s3 + $0x18] sm:$0xff]  ;;  %s738_s10 = scalar_lea.sflag [#allocation3], %s1266_s12 }
  0x19   : > { %927 = vmatpush3.msra.mxu0 %v326_v1  ;;  %928 = vmatprep.mubr.msk.f32.mxu0 %vm332_vm0, %v324_v3  ;;  %v513_v11 = vld [vmem:[%s1401_s3 + $0x20] sm:$0xff]  ;;  %v511_v18 = vld [vmem:[%s1401_s3 + $0x10] sm:$0xff]  ;;  %v510_v19 = vld [vmem:[%s1401_s3 + $0x8] sm:$0xff]  ;;  %p1025_p13 = pneg %p1024_p12 }
  0x1a   : > { %929 = vmatmul.mubr.msk.f32.vlgmr.msra.gmra.mxu0 %vm332_vm0, %v325_v4  ;;  %934 = vmatpush3.msra.mxu1 %v416_v5  ;;  %v874_v13 = vld [vmem:[%s1403_s5] ss:$0 sm:$0xff]  ;;  %v880_v28 = vld [vmem:[%s1403_s5 + $0x1] ss:$0 sm:$0xff]  ;;  %v647_v47 = vld [vmem:[%s1402_s4 + $0x18] sm:$0xff] }
  0x1b   : > { %935 = vmatprep.subr.mxu1 %v415_v6  ;;  %942 = vmatprep.subr.mxu0 %v516_v8  ;;  %v509_v20 = vld [vmem:[%s1401_s3] sm:$0xff]  ;;  %v646_v48 = vld [vmem:[%s1402_s4 + $0x10] sm:$0xff]  ;;  %v645_v49 = vld [vmem:[%s1402_s4 + $0x8] sm:$0xff] }
  0x1c   : > { %936 = vmatpush3.msra.mxu1 %v415_v6  ;;  %943 = vmatpush3.msra.mxu0 %v516_v8  ;;  %v877_v21 = vld [vmem:[%s1404_s6] ss:$0 sm:$0xff]  ;;  %v883_v58 = vld [vmem:[%s1403_s5 + $0x2] ss:$0 sm:$0xff]  ;;  %v884_v60 = vld [vmem:[%s1403_s5 + $0x3] ss:$0 sm:$0xff] }
  0x1d   : > { %937 = vmatprep.subr.mxu1 %v414_v7  ;;  %944 = vmatprep.subr.mxu0 %v515_v9  ;;  %v644_v50 = vld [vmem:[%s1402_s4] sm:$0xff] }
  0x1e   : > { %938 = vmatpush3.msra.mxu1 %v414_v7  ;;  %945 = vmatpush3.msra.mxu0 %v515_v9 }
  0x1f   : > { %946 = vmatprep.subr.mxu0 %v514_v10  ;;  %961 = vmatprep.subr.mxu1 %v647_v47 }
  0x20   : > { %947 = vmatpush3.msra.mxu0 %v514_v10 }
  0x21   : > { %948 = vmatprep.subr.mxu0 %v513_v11 }
  0x22   : > { %949 = vmatpush3.msra.mxu0 %v513_v11 }
  0x23   : > { %950 = vmatprep.subr.mxu0 %v512_v17 }
  0x24   : > { %951 = vmatpush3.msra.mxu0 %v512_v17 }
  0x25   : > { %952 = vmatprep.subr.mxu0 %v511_v18 }
  0x26   : > { %953 = vmatpush3.msra.mxu0 %v511_v18 }
  0x27   : > { %954 = vmatprep.subr.mxu0 %v510_v19 }
  0x28   : > { %955 = vmatpush3.msra.mxu0 %v510_v19 }
  0x29   : > { %956 = vmatprep.subr.mxu0 %v509_v20 }
  0x2a   : > { %957 = vmatpush3.msra.mxu0 %v509_v20 }
  0xda   : > { %v930_v12 = vpop.f32.mrf.mxu0 }
  0xdb   : > { %v411_v16 = vadd.f32 %v930_v12, %v874_v13 }
  0xdc   : > { %v405_v14 = vpop.f32.mrf.mxu0 }
  0xdd   : > { %v406_v15 = vadd.f32 %v874_v13, %v405_v14 }
  0xdf   : > { %939 = vmatprep.mubr.msk.f32.mxu1 %vm425_vm1, %v406_v15 }
  0xe0   : > { %940 = vmatmul.mubr.msk.f32.vlgmr.msra.gmra.mxu1 %vm425_vm1, %v411_v16 }
  0xe1   : > { %962 = vmatpush3.msra.mxu1 %v647_v47 }
  0xe2   : > { %963 = vmatprep.subr.mxu1 %v646_v48 }
  0xe3   : > { %964 = vmatpush3.msra.mxu1 %v646_v48 }
  0xe4   : > { %965 = vmatprep.subr.mxu1 %v645_v49 }
  0xe5   : > { %966 = vmatpush3.msra.mxu1 %v645_v49 }
  0xe6   : > { %967 = vmatprep.subr.mxu1 %v644_v50 }
  0xe7   : > { %968 = vmatpush3.msra.mxu1 %v644_v50 }
 0x1a0   : > { %v941_v22 = vpop.f32.mrf.mxu1 }
 0x1a1   : > { %v504_v23 = vadd.f32 %v941_v22, %v877_v21 }
 0x1a2   : > { %v498_v24 = vpop.f32.mrf.mxu1 }
 0x1a3   : > { %v499_v25 = vadd.f32 %v877_v21, %v498_v24  ;;  %v508_v27 = vmax.f32 %v504_v23, 0.0 }
 0x1a5   : > { %v507_v26 = vmax.f32 %v499_v25, 0.0 }
 0x1a7   : > { %958 = vmatprep.mubr.msk.f32.mxu0 %vm521_vm2, %v507_v26 }
 0x1a8   : > { %959 = vmatmul.mubr.msk.f32.vlgmr.msra.gmra.mxu0 %vm521_vm2, %v508_v27 }
 0x268   : > { %v960_v29 = vpop.f32.mrf.mxu0 }
 0x269   : > { %v600_v30 = vadd.f32 %v960_v29, %v880_v28 }
 0x26a   : > { %v594_v31 = vpop.f32.mrf.mxu0 }
 0x26b   : > { %v604_v32 = vadd.f32 %v600_v30, %v411_v16  ;;  %v595_v33 = vadd.f32 %v880_v28, %v594_v31 }
 0x26d   : > { %736 = vst.msk [vmem:[%s1274_s19 + $0x8] sm:$0xff] %vm425_vm1, %v604_v32  ;;  %v603_v34 = vadd.f32 %v595_v33, %v406_v15  ;;  %v608_v36 = vsel %vm425_vm1, %v604_v32, 0.0 }
 0x26f   : > { %735 = vst.msk [vmem:[%s1274_s19] sm:$0xff] %vm425_vm1, %v603_v34  ;;  %v605_v35 = vsel %vm425_vm1, %v603_v34, 0.0  ;;  %s1026_s19 = sshll.u32 %s1114_s17, 4  ;;  %s1027_s19 = int_to_ptr.vmem [resolvable:$false] %s1026_s19 }
 0x270   : > { %606 = vadd.xlane.f32.xlu0 %v605_v35  ;;  %s1028_s20 = scalar_lea.vmem %s1027_s19, 512  ;;  %p1029_p0 = scmp.lt.s32.totalorder %s1313_s22, %s1027_s19 }
 0x271   : > { %p1030_p1 = scmp.lt.s32.totalorder %s1028_s20, %s1022_s13 }
 0x273   : > { %p1031_p2 = por %p1030_p1, %p1029_p0 }
 0x274   : > { %609 = vadd.xlane.f32.xlu0 %v608_v36 }
 0x275   : > { %p1032_p3 = pnand %p1031_p2, %p1025_p13 }
 0x2f9   : > { %v607_v37 = vpop.xlane.xlu0 %606 }
 0x2fa   : > { %v612_v38 = vmul.f32 0.03125, %v607_v37 }
 0x2fc   : > { %v614_v39 = vsub.f32 %v603_v34, %v612_v38 }
 0x2fd   : > { %v610_v40 = vpop.xlane.xlu0 %609 }
 0x2fe   : > { %v613_v41 = vmul.f32 0.03125, %v610_v40  ;;  %v616_v42 = vmul.f32 %v614_v39, %v614_v39 }
 0x300   : > { %v615_v43 = vsub.f32 %v604_v32, %v613_v41  ;;  %v618_v44 = vsel %vm425_vm1, %v616_v42, 0.0 }
 0x301   : > { %619 = vadd.xlane.f32.xlu1 %v618_v44 }
 0x302   : > { %v617_v45 = vmul.f32 %v615_v43, %v615_v43 }
 0x304   : > { %v621_v46 = vsel %vm425_vm1, %v617_v45, 0.0 }
 0x305   : > { %622 = vadd.xlane.f32.xlu1 %v621_v46 }
 0x38a   : > { %v620_v51 = vpop.xlane.xlu1 %619 }
 0x38b   : > { %v624_v52 = vmul.f32 0.03125, %v620_v51 }
 0x38d   : > { %v626_v53 = vadd.f32 1e-05, %v624_v52 }
 0x38e   : > { %v623_v54 = vpop.xlane.xlu1 %622 }
 0x38f   : > { %1018 = vrsqrt.f32 %v626_v53  ;;  %v625_v55 = vmul.f32 0.03125, %v623_v54 }
 0x391   : > { %v627_v56 = vadd.f32 1e-05, %v625_v55 }
 0x393   : > { %1020 = vrsqrt.f32 %v627_v56 }
 0x39c   : > { %v1019_v57 = vpop.eup %1018 }
 0x39d   : > { %v630_v59 = vmul.f32 %v1019_v57, %v614_v39 }
 0x39f   : > { %v636_v61 = vmul.f32 %v883_v58, %v630_v59 }
 0x3a0   : > { %v1021_v62 = vpop.eup %1020 }
 0x3a1   : > { %v631_v63 = vmul.f32 %v1021_v62, %v615_v43  ;;  %v642_v0 = vadd.f32 %v884_v60, %v636_v61 }
 0x3a3   : > { %v637_v1 = vmul.f32 %v883_v58, %v631_v63  ;;  %969 = vmatprep.mubr.msk.f32.mxu1 %vm425_vm1, %v642_v0 }
 0x3a5   : > { %v643_v2 = vadd.f32 %v884_v60, %v637_v1 }
 0x3a7   : > { %970 = vmatmul.mubr.msk.f32.vlgmr.msra.gmra.mxu1 %vm425_vm1, %v643_v2 }
 0x3a8   : > { %1035 = shalt.err (!%p1032_p3)
}
 0x3a9   : > { %s1036_s21 = scalar_lea.hbm %s1311_s26, 256  ;;  %s1040_s17 = scalar_lea.hbm %s1405_s7, 512 }
 0x3aa   : > { %p1037_p4 = scmp.ne.s32.totalorder %s1311_s26, %s1036_s21  ;;  %p1041_p9 = scmp.lt.s32.totalorder %s1311_s26, %s1405_s7 }
 0x3ab   : > { %p1042_p10 = scmp.lt.s32.totalorder %s1040_s17, %s1036_s21 }
 0x3ac   : > { %p1038_p7 = pnand %p1037_p4, %p1201_p5 }
 0x3ad   : > { %p1043_p11 = por %p1042_p10, %p1041_p9 }
 0x3ae   : > { %p1039_p8 = pneg %p1038_p7 }
 0x3b0   : > { %p1044_p12 = pnand %p1043_p11, %p1039_p8 }
 0x3b2   : > { %1047 = shalt.err (!%p1044_p12)
}
 0x3b3   : > { %s1409_s13 = smov 128   ;;  %s1116_s19 = smov 8   ;;  %v885_v3 = vld [vmem:[%s1403_s5 + $0x4] ss:$0 sm:$0xff] }
 0x3b4   : > { %972 = dma.vmem_to_hbm [thread:$0]  (%p1201_p5), %s1313_s22, 256, %s1311_s26, %s738_s10, %s1409_s13, %s1409_s13, %s1116_s19  }
 0x3b5   : > { %s1412_s20 = sshll.u32 %s1266_s12, 4  ;;  %s1413_s25 = sshll.u32 %s1184_s9, 8 }
 0x3b6   : > { %s310_s21 = scalar_lea.vmem [#allocation4], %s1412_s20  ;;  %s1354_s10 = scalar_lea.hbm %s1406_s8, %s1413_s25 }
 0x3b7   : > { %s772_s24 = sshll.u32 %s310_s21, 4  ;;  %s743_s17 = scalar_lea.sflag [#allocation5], %s1266_s12  ;;  %s1346_s24 = int_to_ptr.vmem [resolvable:$true] %s772_s24 }
 0x3b8   : > { %s1048_s18 = scalar_lea.vmem %s1346_s24, 256  ;;  %s1117_s23 = smov [#allocation4]  }
 0x3b9   : > { %p1049_p13 = scmp.ne.s32.totalorder %s1346_s24, %s1048_s18  ;;  %s1052_s20 = sshll.u32 %s1117_s23, 4  ;;  %s1053_s20 = int_to_ptr.vmem [resolvable:$false] %s1052_s20 }
 0x3ba   : > { %s1054_s13 = scalar_lea.vmem %s1053_s20, 512  ;;  %p1055_p2 = scmp.lt.s32.totalorder %s1346_s24, %s1053_s20 }
 0x3bb   : > { %p1050_p0 = pnand %p1049_p13, %p1201_p5  ;;  %p1056_p3 = scmp.lt.s32.totalorder %s1054_s13, %s1048_s18 }
 0x3bd   : > { %p1051_p1 = pneg %p1050_p0  ;;  %p1057_p4 = por %p1056_p3, %p1055_p2 }
 0x3bf   : > { %p1058_p7 = pnand %p1057_p4, %p1051_p1 }
 0x467   : > { %v971_v4 = vpop.f32.mrf.mxu1 }
 0x468   : > { %v730_v5 = vadd.f32 %v971_v4, %v885_v3 }
 0x469   : > { %v724_v6 = vpop.f32.mrf.mxu1 }
 0x46a   : > { %734 = vst.msk [vmem:[%s310_s21 + $0x8] sm:$0xff] %vm425_vm1, %v730_v5  ;;  %v725_v7 = vadd.f32 %v885_v3, %v724_v6 }
 0x46c   : > { %733 = vst.msk [vmem:[%s310_s21] sm:$0xff] %vm425_vm1, %v725_v7 }
 0x46d   : > { %1061 = shalt.err (!%p1058_p7)
}
 0x46e   : > { %s1062_s9 = scalar_lea.hbm %s1354_s10, 256  ;;  %s1066_s25 = scalar_lea.hbm %s1406_s8, 512 }
 0x46f   : > { %p1063_p8 = scmp.ne.s32.totalorder %s1354_s10, %s1062_s9  ;;  %p1067_p11 = scmp.lt.s32.totalorder %s1354_s10, %s1406_s8 }
 0x470   : > { %p1068_p12 = scmp.lt.s32.totalorder %s1066_s25, %s1062_s9 }
 0x471   : > { %p1064_p9 = pnand %p1063_p8, %p1201_p5 }
 0x472   : > { %p1069_p13 = por %p1068_p12, %p1067_p11 }
 0x473   : > { %p1065_p10 = pneg %p1064_p9 }
 0x475   : > { %p1070_p0 = pnand %p1069_p13, %p1065_p10 }
 0x477   : > { %1073 = shalt.err (!%p1070_p0)
}
 0x478   : > { %s1414_s13 = smov 128  }
 0x479   : > { %973 = dma.vmem_to_hbm [thread:$0]  (%p1201_p5), %s1346_s24, 256, %s1354_s10, %s743_s17, %s1414_s13, %s1414_s13, %s1116_s19  }
 0x47a PF: > { %p983_p1 = scmp.ge.s32.totalorder %s1112_s30, 2  ;;  %s787_s18 = sand.u32 1, %s1100_s27  }
 0x47b   : > { %s788_s23 = scalar_lea.sflag [#allocation3], %s787_s18 }
 0x47c   : > { %p977_p2 = pnand %p983_p1, %p1205_p6 }
 0x47e   : > { %p978_p3 = pneg %p977_p2 }
 0x480   : > { %1091 = dma.done.wait (%p978_p3), %s788_s23, 256  }
 0x481   : > { %1093 = vsyncadd (%p978_p3), %s788_s23, 4294967040  ;;  %s797_s20 = scalar_lea.sflag [#allocation5], %s787_s18 }
 0x482   : > { %1095 = dma.done.wait (%p978_p3), %s797_s20, 256  }
 0x483   : > { %1097 = vsyncadd (%p978_p3), %s797_s20, 4294967040  ;;  %p22_p5 = scmp.ge.s32.totalorder %s1188_s11, 4   ;;  %s1415_s27 = smov %s1104_s28 }
 0x484   : > { %s1416_s28 = smov %s1108_s29  ;;  %s1417_s29 = smov %s1199_s14 }
 0x485   : > { %s1418_s30 = smov %s1188_s11  ;;  %24 = sbr.rel (!%p22_p5) target bundleno = 5 (0x5), region = 100 }
 0x48a   :  { %802 = vsyncpa [#allocation3], 1 }
 0x48b   :  { %804 = vsyncpa [#allocation3 + $0x1], 1 }
 0x48c   :  { %805 = vsyncpa [#allocation5], 1 }
 0x48d   :  { %807 = vsyncpa [#allocation5 + $0x1], 1 }

</bundles_post_ra>
